<compile_context>
chip_gen: v7x
topology: tpu7x:2x2x1
jax: 0.10.0
libtpu: 0.0.40
codegen_flags: <defaults>
</compile_context>

<pallas_src>
import functools

import jax
import jax.numpy as jnp
from jax import lax
from jax.experimental import pallas as pl
from jax.experimental.pallas import tpu as pltpu


def _layer_norm(y, gamma, beta, eps=1e-5):
    mu = jnp.mean(y, axis=-1, keepdims=True)
    var = jnp.mean((y - mu) ** 2, axis=-1, keepdims=True)
    return (y - mu) * lax.rsqrt(var + eps) * gamma + beta


def encoder_layer_kernel(x_ref, wqkv_ref, wff_ref, vec_ref, o_ref, *,
                         n_heads, dim_attn):
    H, A = n_heads, dim_attn
    S, D = x_ref.shape                                     # (seq, dim_val) for ONE batch elem

    x = x_ref[...].astype(jnp.float32)                     # (S, D)

    # --- fused Q/K/(Wv@Wo) projection: one 128-lane-wide matmul ---------------
    # columns: [Q_h0..Q_h{H-1} | K_h0..K_h{H-1} | (Wv@Wo)_h0..(Wv@Wo)_h{H-1}]
    # The 1/sqrt(A) softmax scale is pre-folded into the Q columns (wrapper).
    xqkv = jnp.dot(x, wqkv_ref[...], preferred_element_type=jnp.float32)

    q_off, k_off, v_off = 0, H * A, 2 * H * A

    # --- per-head softmax, then a single fused P @ (Wv@Wo-activations) --------
    p_heads = []
    vo_heads = []
    for h in range(H):                                     # static unroll (tiny H)
        q = xqkv[:, q_off + h * A: q_off + (h + 1) * A]    # (S, A), already scaled
        k = xqkv[:, k_off + h * A: k_off + (h + 1) * A]    # (S, A)
        s = jnp.dot(q, k.T, preferred_element_type=jnp.float32)   # (S, S)
        s = s - jnp.max(s, axis=-1, keepdims=True)
        p = jnp.exp(s)
        p = p / jnp.sum(p, axis=-1, keepdims=True)         # exact divide (cheap at S=8)
        p_heads.append(p)
        vo_heads.append(xqkv[:, v_off + h * D: v_off + (h + 1) * D])  # (S, D)

    p_cat = jnp.concatenate(p_heads, axis=1)               # (S, H*S)  lanes
    vo_cat = jnp.concatenate(vo_heads, axis=0)             # (H*S, D)  sublanes
    a = jnp.dot(p_cat, vo_cat, preferred_element_type=jnp.float32)   # sum_h p_h @ vo_h

    # --- packed small vectors --------------------------------------------------
    vecs = vec_ref[...].astype(jnp.float32)                # (8, D)
    b2, b1 = vecs[0:1], vecs[1:2]                          # fc2.bias, fc1.bias
    g1, be1 = vecs[2:3], vecs[3:4]                         # norm1
    g2, be2 = vecs[4:5], vecs[5:6]                         # norm2

    # --- residual + norm1 ------------------------------------------------------
    x1 = _layer_norm(x + a, g1, be1)

    # --- feed-forward: fc1(elu(fc2(x1))) ---------------------------------------
    hdn = jnp.dot(x1, wff_ref[0], preferred_element_type=jnp.float32) + b2
    hdn = jnp.where(hdn > 0,
                    hdn,
                    jnp.exp(jnp.minimum(hdn, 0.0)) - 1.0)  # ELU(alpha=1), overflow-safe
    a2 = jnp.dot(hdn, wff_ref[1], preferred_element_type=jnp.float32) + b1

    # --- residual + norm2 ------------------------------------------------------
    out = _layer_norm(x1 + a2, g2, be2)
    o_ref[...] = out.astype(o_ref.dtype)


def sensors_encoder_layer(x, pt_params, *, n_heads, dim_attn):
    """x: (B, S, D); pt_params in PyTorch conventions (weight = (out, in))."""
    (wq_pt, wk_pt, wv_pt, wo_pt, fc1_w, fc1_b, fc2_w, fc2_b,
     g1, be1, g2, be2) = pt_params
    B, S, D = x.shape
    H, A = n_heads, dim_attn
    scale = 1.0 / jnp.sqrt(jnp.float32(A))

    # --- offline (wrapper-side, f32) parameter repacking -----------------------
    # torch.stack(dim=-1).flatten(start_dim=2) puts flattened index = d*H + h,
    # so the per-head slice of the output Linear is wo_pt.T rows indexed (d, h).
    wo_rows = jnp.transpose(wo_pt).reshape(D, H, D)                           # [d, h, :]
    # Softmax scale folded into Q weights (exact).
    wq_all = jnp.concatenate([jnp.transpose(wq_pt[h]) * scale for h in range(H)], axis=1)  # (D, H*A)
    wk_all = jnp.concatenate([jnp.transpose(wk_pt[h]) for h in range(H)], axis=1)          # (D, H*A)
    # Fold Wv with the output projection:  x @ Wv_h^T @ Wo_h == x @ (Wv_h^T Wo_h)
    wvo_all = jnp.concatenate(
        [jnp.transpose(wv_pt[h]) @ wo_rows[:, h, :] for h in range(H)], axis=1)            # (D, H*D)
    wqkv = jnp.concatenate([wq_all, wk_all, wvo_all], axis=1)                 # (D, H*(2A+D))

    wff = jnp.stack([jnp.transpose(fc2_w), jnp.transpose(fc1_w)], axis=0)     # (2, D, D)

    vecs = jnp.zeros((8, D), jnp.float32)
    vecs = vecs.at[0].set(fc2_b).at[1].set(fc1_b)
    vecs = vecs.at[2].set(g1).at[3].set(be1).at[4].set(g2).at[5].set(be2)

    QKV = H * (2 * A + D)
    kernel = functools.partial(encoder_layer_kernel, n_heads=H, dim_attn=A)

    out = pl.pallas_call(
        kernel,
        out_shape=jax.ShapeDtypeStruct((B, S, D), x.dtype),
        grid_spec=pltpu.PrefetchScalarGridSpec(
            num_scalar_prefetch=0,
            grid=(B,),                                             # one batch element per step
            in_specs=[
                pl.BlockSpec((None, S, D), lambda b: (b, 0, 0)),   # x[b] -> kernel sees (S, D)
                pl.BlockSpec((D, QKV), lambda b: (0, 0)),          # fused QKV / VO weight (resident)
                pl.BlockSpec((2, D, D), lambda b: (0, 0, 0)),      # [fc2^T, fc1^T]       (resident)
                pl.BlockSpec((8, D), lambda b: (0, 0)),            # biases/gamma/beta    (resident)
            ],
            out_specs=pl.BlockSpec((None, S, D), lambda b: (b, 0, 0)),
        ),
        compiler_params=pltpu.CompilerParams(
            dimension_semantics=("parallel",)),                    # shards over v7x's 2 TCs
    )(x, wqkv, wff, vecs)
    return out


def reference(x, pt_params, *, n_heads, dim_attn):
    """Pure-JAX mirror of the PyTorch forward (PyTorch weight conventions)."""
    (wq_pt, wk_pt, wv_pt, wo_pt, fc1_w, fc1_b, fc2_w, fc2_b,
     g1, be1, g2, be2) = pt_params
    B, S, D = x.shape
    heads = []
    for h in range(n_heads):
        q = x @ wq_pt[h].T
        k = x @ wk_pt[h].T
        v = x @ wv_pt[h].T
        s = (q @ jnp.swapaxes(k, -1, -2)) / jnp.sqrt(jnp.float32(dim_attn))
        heads.append(jax.nn.softmax(s, axis=-1) @ v)
    a = jnp.stack(heads, axis=-1).reshape(B, S, D * n_heads)   # torch stack+flatten
    a = a @ wo_pt.T

    def ln(y, g, b):
        mu = y.mean(-1, keepdims=True)
        var = ((y - mu) ** 2).mean(-1, keepdims=True)
        return (y - mu) / jnp.sqrt(var + 1e-5) * g + b

    x1 = ln(x + a, g1, be1)
    hdn = jax.nn.elu(x1 @ fc2_w.T + fc2_b)
    a2 = hdn @ fc1_w.T + fc1_b
    return ln(x1 + a2, g2, be2)


if __name__ == "__main__":
    B, S = 2, 8
    dim_val, dim_attn, n_heads = 32, 16, 2
    D, A, H = dim_val, dim_attn, n_heads

    key = jax.random.PRNGKey(0)
    ks = list(jax.random.split(key, 14))

    def init(k, shape, scale=0.3):
        return scale * jax.random.normal(k, shape, dtype=jnp.float32)

    # PyTorch-convention parameters (weight shape = (out_features, in_features)).
    wq_pt = init(ks[0], (H, A, D))
    wk_pt = init(ks[1], (H, A, D))
    wv_pt = init(ks[2], (H, D, D))
    wo_pt = init(ks[3], (D, H * D))            # Linear(H*D -> D, bias=False)
    fc1_w = init(ks[4], (D, D)); fc1_b = init(ks[5], (D,))
    fc2_w = init(ks[6], (D, D)); fc2_b = init(ks[7], (D,))
    g1 = 1.0 + init(ks[8], (D,), 0.1);  be1 = init(ks[9], (D,), 0.1)
    g2 = 1.0 + init(ks[10], (D,), 0.1); be2 = init(ks[11], (D,), 0.1)

    x = init(ks[12], (B, S, D), 1.0)

    pt_params = (wq_pt, wk_pt, wv_pt, wo_pt, fc1_w, fc1_b, fc2_w, fc2_b,
                 g1, be1, g2, be2)

    out = sensors_encoder_layer(x, pt_params, n_heads=H, dim_attn=A)
    out = jax.block_until_ready(out)

    ref = reference(x, pt_params, n_heads=H, dim_attn=A)
    assert out.shape == (B, S, D)
    err = float(jnp.max(jnp.abs(out - ref)))
    # Exact softmax divide restored -> only offline Wq-scale / Wv@Wo folding
    # rounding remains, so a tight tolerance holds.
    assert jnp.allclose(out, ref, atol=1e-3, rtol=1e-3), err

    print("KERNEL_OK")
</pallas_src>

<mosaic_0001>
module attributes {stable_mosaic.version = 11 : i64} {
  func.func @encoder_layer_kernel(%arg0: i32, %arg1: memref<1x8x32xf32, #tpu.memory_space<vmem>>, %arg2: memref<32x128xf32, #tpu.memory_space<vmem>>, %arg3: memref<2x32x32xf32, #tpu.memory_space<vmem>>, %arg4: memref<8x32xf32, #tpu.memory_space<vmem>>, %arg5: memref<1x8x32xf32, #tpu.memory_space<vmem>>) attributes {dimension_semantics = [#tpu.dimension_semantics<parallel>], iteration_bounds = array<i64: 2>, scalar_prefetch = 0 : i64, scratch_operands = 0 : i64, tpu.core_type = #tpu.core_type<tc>, window_params = [{transform_indices = @transform_0, window_bounds = array<i64: 1, 8, 32>}, {pipeline_mode = #tpu.pipeline_mode<synchronous>, transform_indices = @transform_1, window_bounds = array<i64: 32, 128>}, {pipeline_mode = #tpu.pipeline_mode<synchronous>, transform_indices = @transform_2, window_bounds = array<i64: 2, 32, 32>}, {pipeline_mode = #tpu.pipeline_mode<synchronous>, transform_indices = @transform_3, window_bounds = array<i64: 8, 32>}, {transform_indices = @transform_4, window_bounds = array<i64: 1, 8, 32>}]} {
    %c0 = arith.constant 0 : index
    %c0_0 = arith.constant 0 : index
    %c0_1 = arith.constant 0 : index
    %0 = vector.load %arg1[%c0, %c0_0, %c0_1] : memref<1x8x32xf32, #tpu.memory_space<vmem>>, vector<1x8x32xf32>
    %1 = vector.shape_cast %0 : vector<1x8x32xf32> to vector<8x32xf32>
    %c0_2 = arith.constant 0 : index
    %c0_3 = arith.constant 0 : index
    %2 = vector.load %arg2[%c0_2, %c0_3] : memref<32x128xf32, #tpu.memory_space<vmem>>, vector<32x128xf32>
    %cst = arith.constant dense<0.000000e+00> : vector<8x128xf32>
    %3 = tpu.matmul %1, %2, %cst {dimension_numbers = #tpu.dot_dimension_numbers<[1], [0], [0], [1], [0, 0, 1, 1], [], []>} : vector<8x32xf32>, vector<32x128xf32>, vector<8x128xf32> -> vector<8x128xf32>
    %4 = vector.extract_strided_slice %3 {offsets = [0, 0], sizes = [8, 16], strides = [1, 1]} : vector<8x128xf32> to vector<8x16xf32>
    %5 = vector.extract_strided_slice %3 {offsets = [0, 32], sizes = [8, 16], strides = [1, 1]} : vector<8x128xf32> to vector<8x16xf32>
    %6 = tpu.transpose %5, [1, 0] : vector<8x16xf32> -> vector<16x8xf32>
    %cst_4 = arith.constant dense<0.000000e+00> : vector<8x8xf32>
    %7 = tpu.matmul %4, %6, %cst_4 {dimension_numbers = #tpu.dot_dimension_numbers<[1], [0], [0], [1], [0, 0, 1, 1], [], []>} : vector<8x16xf32>, vector<16x8xf32>, vector<8x8xf32> -> vector<8x8xf32>
    %cst_5 = arith.constant dense<0xFF800000> : vector<8xf32>
    %8 = vector.multi_reduction <maximumf>, %7, %cst_5 [1] : vector<8x8xf32> to vector<8xf32>
    %9 = vector.shape_cast %8 : vector<8xf32> to vector<8x1xf32>
    %10 = vector.broadcast %9 : vector<8x1xf32> to vector<8x8xf32>
    %11 = arith.subf %7, %10 : vector<8x8xf32>
    %12 = math.exp %11 : vector<8x8xf32>
    %cst_6 = arith.constant dense<0.000000e+00> : vector<8xf32>
    %13 = vector.multi_reduction <add>, %12, %cst_6 [1] : vector<8x8xf32> to vector<8xf32>
    %14 = vector.shape_cast %13 : vector<8xf32> to vector<8x1xf32>
    %15 = vector.broadcast %14 : vector<8x1xf32> to vector<8x8xf32>
    %16 = arith.divf %12, %15 : vector<8x8xf32>
    %17 = vector.extract_strided_slice %3 {offsets = [0, 64], sizes = [8, 32], strides = [1, 1]} : vector<8x128xf32> to vector<8x32xf32>
    %18 = vector.extract_strided_slice %3 {offsets = [0, 16], sizes = [8, 16], strides = [1, 1]} : vector<8x128xf32> to vector<8x16xf32>
    %19 = vector.extract_strided_slice %3 {offsets = [0, 48], sizes = [8, 16], strides = [1, 1]} : vector<8x128xf32> to vector<8x16xf32>
    %20 = tpu.transpose %19, [1, 0] : vector<8x16xf32> -> vector<16x8xf32>
    %cst_7 = arith.constant dense<0.000000e+00> : vector<8x8xf32>
    %21 = tpu.matmul %18, %20, %cst_7 {dimension_numbers = #tpu.dot_dimension_numbers<[1], [0], [0], [1], [0, 0, 1, 1], [], []>} : vector<8x16xf32>, vector<16x8xf32>, vector<8x8xf32> -> vector<8x8xf32>
    %cst_8 = arith.constant dense<0xFF800000> : vector<8xf32>
    %22 = vector.multi_reduction <maximumf>, %21, %cst_8 [1] : vector<8x8xf32> to vector<8xf32>
    %23 = vector.shape_cast %22 : vector<8xf32> to vector<8x1xf32>
    %24 = vector.broadcast %23 : vector<8x1xf32> to vector<8x8xf32>
    %25 = arith.subf %21, %24 : vector<8x8xf32>
    %26 = math.exp %25 : vector<8x8xf32>
    %cst_9 = arith.constant dense<0.000000e+00> : vector<8xf32>
    %27 = vector.multi_reduction <add>, %26, %cst_9 [1] : vector<8x8xf32> to vector<8xf32>
    %28 = vector.shape_cast %27 : vector<8xf32> to vector<8x1xf32>
    %29 = vector.broadcast %28 : vector<8x1xf32> to vector<8x8xf32>
    %30 = arith.divf %26, %29 : vector<8x8xf32>
    %31 = vector.extract_strided_slice %3 {offsets = [0, 96], sizes = [8, 32], strides = [1, 1]} : vector<8x128xf32> to vector<8x32xf32>
    %32 = tpu.concatenate %16, %30 in 1 : vector<8x8xf32>, vector<8x8xf32> -> vector<8x16xf32>
    %33 = tpu.concatenate %17, %31 in 0 : vector<8x32xf32>, vector<8x32xf32> -> vector<16x32xf32>
    %cst_10 = arith.constant dense<0.000000e+00> : vector<8x32xf32>
    %34 = tpu.matmul %32, %33, %cst_10 {dimension_numbers = #tpu.dot_dimension_numbers<[1], [0], [0], [1], [0, 0, 1, 1], [], []>} : vector<8x16xf32>, vector<16x32xf32>, vector<8x32xf32> -> vector<8x32xf32>
    %c0_11 = arith.constant 0 : index
    %c0_12 = arith.constant 0 : index
    %35 = vector.load %arg4[%c0_11, %c0_12] : memref<8x32xf32, #tpu.memory_space<vmem>>, vector<8x32xf32>
    %36 = vector.extract_strided_slice %35 {offsets = [0, 0], sizes = [1, 32], strides = [1, 1]} : vector<8x32xf32> to vector<1x32xf32>
    %37 = vector.extract_strided_slice %35 {offsets = [1, 0], sizes = [1, 32], strides = [1, 1]} : vector<8x32xf32> to vector<1x32xf32>
    %38 = vector.extract_strided_slice %35 {offsets = [2, 0], sizes = [1, 32], strides = [1, 1]} : vector<8x32xf32> to vector<1x32xf32>
    %39 = vector.extract_strided_slice %35 {offsets = [3, 0], sizes = [1, 32], strides = [1, 1]} : vector<8x32xf32> to vector<1x32xf32>
    %40 = vector.extract_strided_slice %35 {offsets = [4, 0], sizes = [1, 32], strides = [1, 1]} : vector<8x32xf32> to vector<1x32xf32>
    %41 = vector.extract_strided_slice %35 {offsets = [5, 0], sizes = [1, 32], strides = [1, 1]} : vector<8x32xf32> to vector<1x32xf32>
    %42 = arith.addf %1, %34 : vector<8x32xf32>
    %cst_13 = arith.constant dense<0.000000e+00> : vector<8xf32>
    %43 = vector.multi_reduction <add>, %42, %cst_13 [1] : vector<8x32xf32> to vector<8xf32>
    %44 = vector.shape_cast %43 : vector<8xf32> to vector<8x1xf32>
    %cst_14 = arith.constant 3.200000e+01 : f32
    %45 = vector.broadcast %cst_14 : f32 to vector<8x1xf32>
    %46 = arith.divf %44, %45 : vector<8x1xf32>
    %47 = vector.broadcast %46 : vector<8x1xf32> to vector<8x32xf32>
    %48 = arith.subf %42, %47 : vector<8x32xf32>
    %49 = arith.mulf %48, %48 : vector<8x32xf32>
    %cst_15 = arith.constant dense<0.000000e+00> : vector<8xf32>
    %50 = vector.multi_reduction <add>, %49, %cst_15 [1] : vector<8x32xf32> to vector<8xf32>
    %51 = vector.shape_cast %50 : vector<8xf32> to vector<8x1xf32>
    %cst_16 = arith.constant 3.200000e+01 : f32
    %52 = vector.broadcast %cst_16 : f32 to vector<8x1xf32>
    %53 = arith.divf %51, %52 : vector<8x1xf32>
    %54 = vector.broadcast %46 : vector<8x1xf32> to vector<8x32xf32>
    %55 = arith.subf %42, %54 : vector<8x32xf32>
    %cst_17 = arith.constant 9.99999974E-6 : f32
    %56 = vector.broadcast %cst_17 : f32 to vector<8x1xf32>
    %57 = arith.addf %53, %56 : vector<8x1xf32>
    %58 = math.rsqrt %57 : vector<8x1xf32>
    %59 = vector.broadcast %58 : vector<8x1xf32> to vector<8x32xf32>
    %60 = arith.mulf %55, %59 : vector<8x32xf32>
    %61 = vector.broadcast %38 : vector<1x32xf32> to vector<8x32xf32>
    %62 = arith.mulf %60, %61 : vector<8x32xf32>
    %63 = vector.broadcast %39 : vector<1x32xf32> to vector<8x32xf32>
    %64 = arith.addf %62, %63 : vector<8x32xf32>
    %c0_18 = arith.constant 0 : index
    %c0_19 = arith.constant 0 : index
    %c0_20 = arith.constant 0 : index
    %65 = vector.load %arg3[%c0_18, %c0_19, %c0_20] : memref<2x32x32xf32, #tpu.memory_space<vmem>>, vector<1x32x32xf32>
    %66 = vector.shape_cast %65 : vector<1x32x32xf32> to vector<32x32xf32>
    %cst_21 = arith.constant dense<0.000000e+00> : vector<8x32xf32>
    %67 = tpu.matmul %64, %66, %cst_21 {dimension_numbers = #tpu.dot_dimension_numbers<[1], [0], [0], [1], [0, 0, 1, 1], [], []>} : vector<8x32xf32>, vector<32x32xf32>, vector<8x32xf32> -> vector<8x32xf32>
    %68 = vector.broadcast %36 : vector<1x32xf32> to vector<8x32xf32>
    %69 = arith.addf %67, %68 : vector<8x32xf32>
    %cst_22 = arith.constant 0.000000e+00 : f32
    %70 = vector.broadcast %cst_22 : f32 to vector<8x32xf32>
    %71 = arith.cmpf ogt, %69, %70 : vector<8x32xf32>
    %cst_23 = arith.constant 0.000000e+00 : f32
    %72 = vector.broadcast %cst_23 : f32 to vector<8x32xf32>
    %73 = arith.minimumf %69, %72 : vector<8x32xf32>
    %74 = math.exp %73 : vector<8x32xf32>
    %cst_24 = arith.constant 1.000000e+00 : f32
    %75 = vector.broadcast %cst_24 : f32 to vector<8x32xf32>
    %76 = arith.subf %74, %75 : vector<8x32xf32>
    %77 = arith.select %71, %69, %76 : vector<8x32xi1>, vector<8x32xf32>
    %c1 = arith.constant 1 : index
    %c0_25 = arith.constant 0 : index
    %c0_26 = arith.constant 0 : index
    %78 = vector.load %arg3[%c1, %c0_25, %c0_26] : memref<2x32x32xf32, #tpu.memory_space<vmem>>, vector<1x32x32xf32>
    %79 = vector.shape_cast %78 : vector<1x32x32xf32> to vector<32x32xf32>
    %cst_27 = arith.constant dense<0.000000e+00> : vector<8x32xf32>
    %80 = tpu.matmul %77, %79, %cst_27 {dimension_numbers = #tpu.dot_dimension_numbers<[1], [0], [0], [1], [0, 0, 1, 1], [], []>} : vector<8x32xf32>, vector<32x32xf32>, vector<8x32xf32> -> vector<8x32xf32>
    %81 = vector.broadcast %37 : vector<1x32xf32> to vector<8x32xf32>
    %82 = arith.addf %80, %81 : vector<8x32xf32>
    %83 = arith.addf %64, %82 : vector<8x32xf32>
    %cst_28 = arith.constant dense<0.000000e+00> : vector<8xf32>
    %84 = vector.multi_reduction <add>, %83, %cst_28 [1] : vector<8x32xf32> to vector<8xf32>
    %85 = vector.shape_cast %84 : vector<8xf32> to vector<8x1xf32>
    %cst_29 = arith.constant 3.200000e+01 : f32
    %86 = vector.broadcast %cst_29 : f32 to vector<8x1xf32>
    %87 = arith.divf %85, %86 : vector<8x1xf32>
    %88 = vector.broadcast %87 : vector<8x1xf32> to vector<8x32xf32>
    %89 = arith.subf %83, %88 : vector<8x32xf32>
    %90 = arith.mulf %89, %89 : vector<8x32xf32>
    %cst_30 = arith.constant dense<0.000000e+00> : vector<8xf32>
    %91 = vector.multi_reduction <add>, %90, %cst_30 [1] : vector<8x32xf32> to vector<8xf32>
    %92 = vector.shape_cast %91 : vector<8xf32> to vector<8x1xf32>
    %cst_31 = arith.constant 3.200000e+01 : f32
    %93 = vector.broadcast %cst_31 : f32 to vector<8x1xf32>
    %94 = arith.divf %92, %93 : vector<8x1xf32>
    %95 = vector.broadcast %87 : vector<8x1xf32> to vector<8x32xf32>
    %96 = arith.subf %83, %95 : vector<8x32xf32>
    %cst_32 = arith.constant 9.99999974E-6 : f32
    %97 = vector.broadcast %cst_32 : f32 to vector<8x1xf32>
    %98 = arith.addf %94, %97 : vector<8x1xf32>
    %99 = math.rsqrt %98 : vector<8x1xf32>
    %100 = vector.broadcast %99 : vector<8x1xf32> to vector<8x32xf32>
    %101 = arith.mulf %96, %100 : vector<8x32xf32>
    %102 = vector.broadcast %40 : vector<1x32xf32> to vector<8x32xf32>
    %103 = arith.mulf %101, %102 : vector<8x32xf32>
    %104 = vector.broadcast %41 : vector<1x32xf32> to vector<8x32xf32>
    %105 = arith.addf %103, %104 : vector<8x32xf32>
    %c0_33 = arith.constant 0 : index
    %c0_34 = arith.constant 0 : index
    %c0_35 = arith.constant 0 : index
    %106 = vector.load %arg5[%c0_33, %c0_34, %c0_35] : memref<1x8x32xf32, #tpu.memory_space<vmem>>, vector<1x8x32xf32>
    %107 = vector.shape_cast %106 : vector<1x8x32xf32> to vector<8x32xf32>
    %108 = vector.shape_cast %105 : vector<8x32xf32> to vector<1x8x32xf32>
    tpu.vector_store %arg5[%c0_33, %c0_34, %c0_35], %108 {strides = array<i32>} : memref<1x8x32xf32, #tpu.memory_space<vmem>>, vector<1x8x32xf32>,
    return
  }
  func.func @transform_0(%arg0: i32) -> (i32, i32, i32) {
    %c0_i32 = arith.constant 0 : i32
    %c0_i32_0 = arith.constant 0 : i32
    %c0_i32_1 = arith.constant 0 : i32
    return %arg0, %c0_i32, %c0_i32_0 : i32, i32, i32
  }
  func.func @transform_1(%arg0: i32) -> (i32, i32) {
    %c0_i32 = arith.constant 0 : i32
    %c0_i32_0 = arith.constant 0 : i32
    %c0_i32_1 = arith.constant 0 : i32
    return %c0_i32, %c0_i32_0 : i32, i32
  }
  func.func @transform_2(%arg0: i32) -> (i32, i32, i32) {
    %c0_i32 = arith.constant 0 : i32
    %c0_i32_0 = arith.constant 0 : i32
    %c0_i32_1 = arith.constant 0 : i32
    %c0_i32_2 = arith.constant 0 : i32
    return %c0_i32, %c0_i32_0, %c0_i32_1 : i32, i32, i32
  }
  func.func @transform_3(%arg0: i32) -> (i32, i32) {
    %c0_i32 = arith.constant 0 : i32
    %c0_i32_0 = arith.constant 0 : i32
    %c0_i32_1 = arith.constant 0 : i32
    return %c0_i32, %c0_i32_0 : i32, i32
  }
  func.func @transform_4(%arg0: i32) -> (i32, i32, i32) {
    %c0_i32 = arith.constant 0 : i32
    %c0_i32_0 = arith.constant 0 : i32
    %c0_i32_1 = arith.constant 0 : i32
    return %arg0, %c0_i32, %c0_i32_0 : i32, i32, i32
  }
}

</mosaic_0001>

<bundles_post_ra>
// kernel: tpu_custom_call.1
= control target key start
LH: loop header
LB: loop body
LE: loop exit
PB: predicated region body
PF: predicated region fallthrough
CT: control target
= control target key end

     0   :  { %9 = vsyncpa [#allocation3], 0  ;;  %s1597_s0 = inlined_call_operand.hbm [shape: f32[2,8,32], index: 0, kind: input, shape index: {}]   ;;  %s1598_s1 = inlined_call_operand.hbm [shape: f32[32,128], index: 1, kind: input, shape index: {}]   ;;  %s1599_s2 = inlined_call_operand.hbm [shape: f32[2,32,32], index: 2, kind: input, shape index: {}]   ;;  %s1600_s3 = inlined_call_operand.vmem [shape: f32[8,32], index: 3, kind: input, shape index: {}]   ;;  %s1601_s4 = inlined_call_operand.hbm [shape: f32[2,8,32], index: 4, kind: output, shape index: {}]  }
   0x1   :  { %11 = vsyncpa [#allocation3 + $0x1], 0 }
   0x2   :  { %12 = vsyncpa [#allocation6], 0 }
   0x3   :  { %13 = vsyncpa [#allocation4], 0 }
   0x4   :  { %15 = vsyncpa [#allocation4 + $0x1], 0  ;;  %s1318_s15 = smov 0   ;;  %s1320_s16 = smov 0  }
   0x5   :  { %s1322_s17 = smov 0   ;;  %s1324_s18 = smov 0  }
   0x6 LB: > { %s1339_s19 = sadd.s32 4294967295, %s1277_s18   ;;  %s907_s20 = sadd.s32 4294967294, %s1277_s18   ;;  %s1277_s18 = sphi %s1324_s18, %s1621_s18   ;;  %s1273_s17 = sphi %s1322_s17, %s1620_s17   ;;  %s1269_s16 = sphi %s1320_s16, %s1619_s16   ;;  %s1265_s15 = sphi %s1318_s15, %s1618_s15  }
   0x7   : > { %p41_p0 = scmp.ne.s32.totalorder %s1269_s16, %s1265_s15  ;;  %p1602_p1 = scmp.eq.s32.totalorder %s1339_s19, 0 }
   0x8   : > { %p134_p3 = scmp.eq.s32.totalorder %s907_s20, 1  ;;  %p908_p5 = scmp.ge.s32.totalorder %s1277_s18, 1 }
   0x9   : > { %p1348_p4 = por %p1602_p1, %p41_p0  ;;  %p141_p7 = scmp.lt.s32.totalorder %s1277_s18, 3 }
   0xa   : > { %p1353_p6 = por %p134_p3, %p41_p0  ;;  %s1279_s24 = smov [#allocation5]  }
   0xb   : > { %s1605_s21 = scalar_select %p1348_p4, 1, 0 }
   0xc   : > { %s1606_s22 = scalar_select %p1353_p6, 1, 0 }
   0xd   : > { %p1358_p8 = pnand %p908_p5, %p141_p7  ;;  %s153_s25 = sshll.u32 %s1279_s24, 4  ;;  %s1362_s25 = int_to_ptr.vmem [resolvable:$true] %s153_s25 }
   0xe   : > { %s1280_s27 = smov [#allocation7]   ;;  %s1121_s5 = scalar_lea.hbm %s1598_s1, 512 }
   0xf   : > { %p1037_p9 = pneg %p1358_p8  ;;  %s166_s28 = sshll.u32 %s1280_s27, 4  ;;  %s1373_s28 = int_to_ptr.vmem [resolvable:$true] %s166_s28 }
  0x10   : > { %p1122_p12 = scmp.ne.s32.totalorder %s1598_s1, %s1121_s5  ;;  %p1128_p5 = scmp.lt.u32.totalorder %s1121_s5, %s1598_s1 }
  0x11   : > { %p1369_p11 = pnand %p1037_p9, %p1602_p1 }
  0x13   : > { %p1123_p13 = pneg %p1369_p11 }
  0x15   : > { %p1124_p0 = pnand %p1123_p13, %p1122_p12 }
  0x17   : > { %p1125_p3 = pneg %p1124_p0 }
  0x19   : > { %p1130_p7 = pnand %p1128_p5, %p1125_p3 }
  0x1b   : > { %1133 = shalt.err (!%p1130_p7)
}
  0x1c   : > { %s1134_s10 = scalar_lea.vmem %s1362_s25, 512  ;;  %p1142_p2 = scmp.lt.s32.totalorder %s1362_s25, %s1362_s25 }
  0x1d   : > { %p1135_p9 = scmp.ne.s32.totalorder %s1362_s25, %s1134_s10  ;;  %p1143_p12 = scmp.lt.s32.totalorder %s1134_s10, %s1134_s10 }
  0x1f   : > { %p1137_p10 = pnand %p1135_p9, %p1123_p13  ;;  %p1144_p0 = por %p1143_p12, %p1142_p2 }
  0x21   : > { %p1138_p1 = pneg %p1137_p10 }
  0x23   : > { %p1145_p6 = pnand %p1144_p0, %p1138_p1 }
  0x25   : > { %1148 = shalt.err (!%p1145_p6)
}
  0x26   : > { %s1281_s11 = smov 128   ;;  %s1282_s12 = smov 8  }
  0x27   : > { %1040 = dma.hbm_to_vmem [thread:$0]  (!%p1369_p11), %s1598_s1, 512, %s1362_s25, [#allocation6], %s1281_s11, %s1281_s11, %s1282_s12  }
  0x28   : > { %s1149_s27 = scalar_lea.hbm %s1599_s2, 1024 }
  0x29   : > { %p1150_p2 = scmp.ne.s32.totalorder %s1599_s2, %s1149_s27  ;;  %p1156_p10 = scmp.lt.u32.totalorder %s1149_s27, %s1599_s2 }
  0x2b   : > { %p1152_p1 = pnand %p1150_p2, %p1123_p13 }
  0x2d   : > { %p1153_p6 = pneg %p1152_p1 }
  0x2f   : > { %p1158_p3 = pnand %p1156_p10, %p1153_p6 }
  0x31   : > { %1161 = shalt.err (!%p1158_p3)
}
  0x32   : > { %s1162_s25 = scalar_lea.vmem %s1373_s28, 1024  ;;  %p1170_p12 = scmp.lt.s32.totalorder %s1373_s28, %s1373_s28 }
  0x33   : > { %p1163_p5 = scmp.ne.s32.totalorder %s1373_s28, %s1162_s25  ;;  %p1171_p0 = scmp.lt.s32.totalorder %s1162_s25, %s1162_s25 }
  0x35   : > { %p1165_p7 = pnand %p1163_p5, %p1123_p13  ;;  %p1172_p2 = por %p1171_p0, %p1170_p12 }
  0x37   : > { %p1166_p9 = pneg %p1165_p7 }
  0x39   : > { %p1173_p1 = pnand %p1172_p2, %p1166_p9 }
  0x3b   : > { %1176 = shalt.err (!%p1173_p1)
}
  0x3c   : > { %1043 = dma.hbm_to_vmem [thread:$0]  (!%p1369_p11), %s1599_s2, 1024, %s1373_s28, [#allocation6], %s1281_s11, %s1281_s11, %s1282_s12  }
  0x3d   : > { %s1428_s9 = sadd.s32 1, %s1277_s18   ;;  %s28_s26 = sadd.s32 1, %s1273_s17 }
  0x3e   : > { %s25_s10 = ssub.s32 %s1277_s18, %s1428_s9  ;;  %p35_p13 = scmp.ne.s32.totalorder %s1273_s17, %s1269_s16 }
  0x3f   : > { %p26_p6 = scmp.eq.s32.totalorder %s25_s10, 0  ;;  %p36_p10 = scmp.eq.s32.totalorder %s1277_s18, 0 }
  0x40   : > { %p1609_p3 = scmp.eq.s32.totalorder %s1339_s19, 1  ;;  %p1054_p7 = scmp.lt.s32.totalorder %s1277_s18, 2 }
  0x41   : > { %s1444_s14 = scalar_select %p26_p6, %s1273_s17, %s28_s26  }
  0x42   : > { %p1438_p5 = por %p1609_p3, %p35_p13  ;;  %p37_p9 = por %p36_p10, %p35_p13 }
  0x43   : > { %s183_s20 = sand.u32 1, %s1273_s17   ;;  %s913_s28 = sshll.u32 %s1277_s18, 7 }
  0x44   : > { %s1610_s13 = scalar_select %p1438_p5, 1, 0 }
  0x45   : > { %s912_s24 = sshll.u32 %s183_s20, 3  ;;  %s1451_s27 = scalar_lea.hbm %s1597_s0, %s913_s28 }
  0x46   : > { %s187_s29 = scalar_lea.vmem [#allocation2], %s912_s24  ;;  %p1455_p11 = pnand %p1054_p7, %p37_p9 }
  0x47   : > { %s194_s30 = sshll.u32 %s187_s29, 4  ;;  %s184_s6 = scalar_lea.sflag [#allocation3], %s183_s20  ;;  %s1453_s30 = int_to_ptr.vmem [resolvable:$true] %s194_s30 }
  0x48   : > { %s1177_s25 = scalar_lea.hbm %s1451_s27, 128  ;;  %p1179_p0 = pneg %p1455_p11 }
  0x49   : > { %p1178_p12 = scmp.ne.s32.totalorder %s1451_s27, %s1177_s25  ;;  %s1182_s26 = scalar_lea.hbm %s1597_s0, 256 }
  0x4a   : > { %p1183_p13 = scmp.lt.u32.totalorder %s1451_s27, %s1597_s0  ;;  %p1184_p6 = scmp.lt.u32.totalorder %s1182_s26, %s1177_s25 }
  0x4b   : > { %p1180_p2 = pnand %p1179_p0, %p1178_p12  ;;  %p1186_p3 = scmp.lt.u32.totalorder %s1177_s25, %s1451_s27 }
  0x4c   : > { %p1185_p10 = por %p1184_p6, %p1183_p13 }
  0x4d   : > { %p1181_p1 = pneg %p1180_p2 }
  0x4e   : > { %p1187_p7 = por %p1186_p3, %p1185_p10 }
  0x50   : > { %p1188_p9 = pnand %p1187_p7, %p1181_p1 }
  0x52   : > { %1191 = shalt.err (!%p1188_p9)
}
  0x53   : > { %s1192_s20 = scalar_lea.vmem %s1453_s30, 128  ;;  %s1283_s28 = smov [#allocation2]  }
  0x54   : > { %p1193_p12 = scmp.ne.s32.totalorder %s1453_s30, %s1192_s20  ;;  %s1197_s11 = sshll.u32 %s1283_s28, 4  ;;  %s1198_s11 = int_to_ptr.vmem [resolvable:$false] %s1197_s11 }
  0x55   : > { %s1199_s12 = scalar_lea.vmem %s1198_s11, 256  ;;  %p1200_p4 = scmp.lt.s32.totalorder %s1453_s30, %s1198_s11 }
  0x56   : > { %p1195_p2 = pnand %p1193_p12, %p1179_p0  ;;  %p1201_p13 = scmp.lt.s32.totalorder %s1199_s12, %s1192_s20 }
  0x58   : > { %p1196_p5 = pneg %p1195_p2  ;;  %p1202_p6 = por %p1201_p13, %p1200_p4 }
  0x5a   : > { %p1203_p10 = pnand %p1202_p6, %p1196_p5 }
  0x5c   : > { %1206 = shalt.err (!%p1203_p10)
}
  0x5d   : > { %1047 = dma.hbm_to_vmem [thread:$0]  (!%p1455_p11), %s1451_s27, 128, %s1453_s30, %s184_s6  }
  0x5e   : > { %203 = sbr.rel (%p1358_p8) target bundleno = 2393 (0x959), region = 36  ;;  %s1487_s29 = sand.u32 (!%p1358_p8), 1, %s1269_s16  }
  0x5f   : > { %s915_s25 = sshll.u32 (!%p1358_p8), %s1487_s29, 3  ;;  %s206_s7 = scalar_lea.sflag (!%p1358_p8), [#allocation3], %s1487_s29 }
  0x60   : > { %s209_s8 = scalar_lea.vmem (!%p1358_p8), [#allocation2], %s915_s25  ;;  %p1612_p4 = scmp.ne.s32.totalorder (!%p1358_p8), %s1605_s21, 0 }
  0x65   : > { %1252 = dma.done.wait (%p1612_p4), %s206_s7, 128  }
  0x66   : > { %1254 = vsyncadd (%p1612_p4), %s206_s7, 4294967168  ;;  %p1613_p5 = scmp.eq.s32.totalorder %s1339_s19, 0 }
  0x68   : > { %1256 = dma.done.wait (%p1613_p5), [#allocation6], 1536   ;;  %p1614_p8 = pmov %p1613_p5 }
  0x69   : > { %v1284_v0 = vmov 0.0|0.0   ;;  %vm1285_vm0 = vmmov 0   ;;  %v1286_v1 = vmov 0.0   ;;  %v243_v2 = vld [vmem:[#allocation5] sm:$0xff]  ;;  %v244_v3 = vld [vmem:[#allocation5 + $0x8] sm:$0xff]  ;;  %v245_v4 = vld [vmem:[#allocation5 + $0x10] sm:$0xff]  ;;  %v600_v60 = vlaneseq }
  0x6a   : > { %1258 = vsyncadd (%p1614_p8), [#allocation6], 4294965760  ;;  %1004 = vmatprep.subr.bf16.mxu0 %v1284_v0  ;;  %962 = vmatprep.mubr.msk.f32.mxu0 %vm1285_vm0, %v1286_v1  ;;  %v1005_v5 = vpack.c.bf16 %v244_v3, %v243_v2  ;;  %v246_v6 = vld [vmem:[#allocation5 + $0x18] sm:$0xff]  ;;  %vm247_vm1 = vcmask 261120   ;;  %s1287_s21 = smov 112   ;;  %s1288_s23 = smov 96  }
  0x6b   : > { %965 = vmatprep.subr.mxu1 %v1286_v1  ;;  %967 = vmatprep.mubr.msk.f32.mxu1 %vm1285_vm0, %v1286_v1  ;;  %v1008_v7 = vpack.c.bf16 %v246_v6, %v245_v4  ;;  %v1508_v8 = vld [vmem:[%s209_s8] sm:$0xff]  ;;  %s1289_s27 = smov 80   ;;  %vm324_vm2 = vcmask 130048   ;;  %vm399_vm3 = vcmask 64512   ;;  %s1290_s30 = smov 64   ;;  %v610_v52 = vld [vmem:[#allocation7] sm:$0xff] }
  0x6c   : > { %1006 = vmatpush3.bf16.msra.mxu0 %v1005_v5  ;;  %s1291_s5 = smov 8   ;;  %v611_v53 = vld [vmem:[#allocation7 + $0x8] sm:$0xff]  ;;  %v612_v55 = vld [vmem:[#allocation7 + $0x10] sm:$0xff]  ;;  %v613_v56 = vld [vmem:[#allocation7 + $0x18] sm:$0xff]  ;;  %v601_v62 = vshrl.u32 %v600_v60, 7  ;;  %s929_s10 = sshll.u32 %s1339_s19, 7 }
  0x6d   : > { %1007 = vmatprep.subr.bf16.mxu0 %v1284_v0  ;;  %v1014_v54 = vpack.c.bf16 %v611_v53, %v610_v52  ;;  %v1017_v57 = vpack.c.bf16 %v613_v56, %v612_v55  ;;  %s241_s24 = scalar_lea.vmem [#allocation8], %s915_s25  ;;  %s1552_s12 = scalar_lea.hbm %s1601_s4, %s929_s10 }
  0x6e   : > { %v602_v63 = vsub.s32 2, %v601_v62  ;;  %v607_v2 = vsub.s32 3, %v601_v62  ;;  %s818_s20 = sshll.u32 %s241_s24, 4  ;;  %s805_s7 = scalar_lea.sflag [#allocation4], %s1487_s29  ;;  %s1554_s20 = int_to_ptr.vmem [resolvable:$true] %s818_s20 }
  0x6f   : > { %s1207_s8 = scalar_lea.vmem %s1554_s20, 128  ;;  %p1615_p0 = scmp.ne.s32.totalorder %s1610_s13, 0 }
  0x70   : > { %1009 = vmatpush3.bf16.msra.mxu0 %v1008_v7  ;;  %p1208_p11 = scmp.ne.s32.totalorder %s1554_s20, %s1207_s8  ;;  %s1292_s19 = smov [#allocation8]  }
  0x71   : > { %1010 = vmatprep.subr.bf16.mxu0 %v1284_v0  ;;  %s1211_s25 = sshll.u32 %s1292_s19, 4  ;;  %s1212_s25 = int_to_ptr.vmem [resolvable:$false] %s1211_s25 }
  0x72   : > { %p1209_p1 = pnand %p1208_p11, %p1615_p0  ;;  %p1214_p7 = scmp.lt.s32.totalorder %s1554_s20, %s1212_s25 }
  0x73   : > { %963 = vmatmul.mubr.msk.f32.vlgmr.msra.gmra.mrb[0].mxu0 %vm247_vm1, %v1508_v8 }
  0x74   : > { %979 = vmatprep.mubr.msk.f32.mxu0 %vm1285_vm0, %v1286_v1  ;;  %p1210_p3 = pneg %p1209_p1 }
 0x146   : > { %v317_v9 = vpop.f32.mrb[0].mxu0 }
 0x147   : > { %411 = vrot.lane.b32.xlu1 %v317_v9, %s1287_s21  ;;  %322 = vrot.lane.b32.xlu0 %v317_v9, %s1288_s23  ;;  %v964_v10 = vpop.f32.mrb[1].mxu0  ;;  %s1213_s21 = scalar_lea.vmem %s1212_s25, 256 }
 0x148   : > { %v699_v10 = vld [vmem:[#allocation7 + $0x28] sm:$0xff]  ;;  %p1215_p9 = scmp.lt.s32.totalorder %s1213_s21, %s1207_s8 }
 0x14a   : > { %p1216_p12 = por %p1215_p9, %p1214_p7 }
 0x14b   : > { %413 = vrot.lane.b32.xlu0 %v317_v9, %s1289_s27 }
 0x14c   : > { %p1217_p2 = pnand %p1216_p12, %p1210_p3 }
 0x1b9   : > { %v323_v11 = vpop.permute.xlu0 %322  ;;  %v412_v14 = vpop.permute.xlu1 %411 }
 0x1ba   : > { %v1102_v12 = vpack.i.bf16 %v323_v11, %v317_v9  ;;  %966 = vmatpush3.xpose.msk.msra.mxu1 %vm324_vm2, %v323_v11 }
 0x1bb   : > { %970 = vmatprep.subr.mxu1 %v1286_v1 }
 0x1bd   : > { %968 = vmatmul.mubr.msk.f32.vlgmr.msra.gmra.mrb[0].mxu1 %vm324_vm2, %v317_v9  ;;  %v414_v13 = vpop.permute.xlu0 %413  ;;  %v698_v9 = vld [vmem:[#allocation7 + $0x20] sm:$0xff] }
 0x1be   : > { %971 = vmatpush3.xpose.msk.msra.mxu1 %vm324_vm2, %v414_v13  ;;  %972 = vmatprep.mubr.msk.f32.mxu1 %vm1285_vm0, %v1286_v1  ;;  %v1020_v11 = vpack.c.bf16 %v699_v10, %v698_v9  ;;  %v701_v13 = vld [vmem:[#allocation7 + $0x38] sm:$0xff] }
 0x1bf   : > { %1013 = vmatprep.subr.bf16.mxu1 %v1284_v0 }
 0x1c1   : > { %973 = vmatmul.mubr.msk.f32.vlgmr.msra.gmra.mrb[2].mxu1 %vm324_vm2, %v412_v14 }
 0x1c2   : > { %990 = vmatprep.mubr.msk.f32.mxu1 %vm1285_vm0, %v1286_v1  ;;  %1015 = vmatpush3.bf16.msra.mxu1 %v1014_v54 }
 0x1c3   : > { %1016 = vmatprep.subr.bf16.mxu1 %v1284_v0 }
 0x1c6   : > { %1018 = vmatpush3.bf16.msra.mxu1 %v1017_v57 }
 0x290   : > { %v395_v15 = vpop.f32.mrb[0].mxu1 }
 0x291   : > { %v969_v16 = vpop.f32.mrb[1].mxu1  ;;  %v400_v17 = vsel %vm399_vm3, %v395_v15, -inf }
 0x292   : > { %401 = vmax.xlane.f32.xlu0 %v400_v17 }
 0x294   : > { %v485_v18 = vpop.f32.mrb[2].mxu1 }
 0x295   : > { %v974_v19 = vpop.f32.mrb[3].mxu1  ;;  %v489_v20 = vsel %vm399_vm3, %v485_v18, -inf }
 0x296   : > { %490 = vmax.xlane.f32.xlu1 %v489_v20 }
 0x31f   : > { %v402_v21 = vpop.xlane.xlu0 %401 }
 0x320   : > { %v403_v22 = vsub.f32 %v395_v15, %v402_v21  ;;  %v616_v15 = vsub.s32 0, %v601_v62 }
 0x322   : > { %v404_v23 = vmul.f32 1.442695, %v403_v22 }
 0x323   : > { %v491_v24 = vpop.xlane.xlu1 %490 }
 0x324   : > { %1107 = vpow2.f32 %v404_v23  ;;  %v492_v25 = vsub.f32 %v485_v18, %v491_v24 }
 0x326   : > { %v493_v26 = vmul.f32 1.442695, %v492_v25  ;;  %v704_v25 = vsub.s32 1, %v601_v62 }
 0x328   : > { %1109 = vpow2.f32 %v493_v26 }
 0x32e   : > { %v1108_v27 = vpop.eup %1107 }
 0x32f   : > { %v406_v28 = vsel %vm399_vm3, %v1108_v27, 0.0 }
 0x330   : > { %407 = vadd.xlane.f32.xlu1 %v406_v28 }
 0x332   : > { %v1110_v29 = vpop.eup %1109 }
 0x333   : > { %v495_v30 = vsel %vm399_vm3, %v1110_v29, 0.0 }
 0x334   : > { %496 = vadd.xlane.f32.xlu0 %v495_v30 }
 0x34a   : > { %1103 = vrot.lane.b32.xlu0 %v1102_v12, %s1290_s30  ;;  %v700_v12 = vld [vmem:[#allocation7 + $0x30] sm:$0xff] }
 0x34b   : > { %v1023_v14 = vpack.c.bf16 %v701_v13, %v700_v12 }
 0x3bd   : > { %v408_v38 = vpop.xlane.xlu1 %407 }
 0x3c1   : > { %v497_v31 = vpop.xlane.xlu0 %496 }
 0x3c2   : > { %1111 = vrcp.f32 %v497_v31 }
 0x3c3   : > { %1113 = vrcp.f32 %v408_v38 }
 0x3c5   : > { %v1104_v32 = vpop.permute.xlu0 %1103 }
 0x3c6   : > { %v1106_v33 = vunpack.i.h.bf16 %v1104_v32  ;;  %v1105_v34 = vunpack.i.l.bf16 %v1104_v32 }
 0x3c8   : > { %v1011_v35 = vpack.c.bf16 %v1106_v33, %v1105_v34 }
 0x3ca   : > { %1012 = vmatpush3.bf16.msra.mxu0 %v1011_v35 }
 0x3cb   : > { %1019 = vmatprep.subr.bf16.mxu0 %v1284_v0 }
 0x3cc   : > { %v1112_v36 = vpop.eup %1111 }
 0x3cd   : > { %v499_v37 = vmul.f32 %v1112_v36, %v1110_v29  ;;  %v1114_v39 = vpop.eup %1113 }
 0x3ce   : > { %v410_v40 = vmul.f32 %v1114_v39, %v1108_v27  ;;  %v795_v39 = vsub.s32 4, %v601_v62 }
 0x3cf   : > { %501 = vrot.lane.b32.xlu1 %v499_v37, %s1291_s5 }
 0x441   : > { %v502_v41 = vpop.permute.xlu1 %501 }
 0x442   : > { %v504_v42 = vsel %vm399_vm3, %v410_v40, %v502_v41  ;;  %v800_v40 = vsub.s32 5, %v601_v62 }
 0x443   : > { %980 = vmatmul.mubr.msk.f32.vlgmr.msra.gmra.mrb[2].mxu0 %vm324_vm2, %v504_v42 }
 0x444   : > { %1001 = vmatprep.mubr.msk.f32.mxu0 %vm1285_vm0, %v1286_v1  ;;  %v584_v1 = vld [vmem:[%s1600_s3] sm:$0xff]  ;;  %1021 = vmatpush3.bf16.msra.mxu0 %v1020_v11 }
 0x445   : > { %v603_v3 = vrot.slane %v584_v1, %v602_v63  ;;  %v608_v6 = vrot.slane %v584_v1, %v607_v2  ;;  %1022 = vmatprep.subr.bf16.mxu0 %v1284_v0  ;;  %v617_v16 = vrot.slane %v584_v1, %v616_v15  ;;  %v705_v0 = vrot.slane %v584_v1, %v704_v25 }
 0x446   : > { %v796_v41 = vrot.slane %v584_v1, %v795_v39 }
 0x448   : > { %1024 = vmatpush3.bf16.msra.mxu0 %v1023_v14 }
 0x516   : > { %v580_v43 = vpop.f32.mrb[2].mxu0 }
 0x517   : > { %v585_v44 = vadd.f32 %v580_v43, %v1508_v8  ;;  %v981_v45 = vpop.f32.mrb[3].mxu0 }
 0x519   : > { %v586_v46 = vsel %vm247_vm1, %v585_v44, 0.0 }
 0x51a   : > { %587 = vadd.xlane.f32.xlu1 %v586_v46 }
 0x5a7   : > { %v588_v47 = vpop.xlane.xlu1 %587 }
 0x5a8   : > { %v590_v48 = vmul.f32 0.03125, %v588_v47 }
 0x5aa   : > { %v591_v49 = vsub.f32 %v585_v44, %v590_v48  ;;  %v801_v44 = vrot.slane %v584_v1, %v800_v40 }
 0x5ac   : > { %v592_v50 = vmul.f32 %v591_v49, %v591_v49 }
 0x5ae   : > { %v593_v51 = vsel %vm247_vm1, %v592_v50, 0.0 }
 0x5af   : > { %594 = vadd.xlane.f32.xlu0 %v593_v51 }
 0x63c   : > { %v595_v58 = vpop.xlane.xlu0 %594 }
 0x63d   : > { %v596_v59 = vmul.f32 0.03125, %v595_v58 }
 0x63f   : > { %v597_v61 = vadd.f32 1e-05, %v596_v59 }
 0x641   : > { %1115 = vrsqrt.f32 %v597_v61 }
 0x64b   : > { %v1116_v4 = vpop.eup %1115 }
 0x64c   : > { %v599_v5 = vmul.f32 %v1116_v4, %v591_v49 }
 0x64e   : > { %v604_v7 = vmul.f32 %v603_v3, %v599_v5 }
 0x650   : > { %v609_v8 = vadd.f32 %v608_v6, %v604_v7 }
 0x652   : > { %991 = vmatmul.mubr.msk.f32.vlgmr.msra.gmra.mrb[4].mxu1 %vm247_vm1, %v609_v8 }
 0x725   : > { %v687_v17 = vpop.f32.mrb[4].mxu1 }
 0x726   : > { %v688_v18 = vadd.f32 %v687_v17, %v617_v16  ;;  %v992_v19 = vpop.f32.mrb[5].mxu1 }
 0x728   : > { %v692_v20 = vmin.f32 %v688_v18, 0.0  ;;  %vm691_vm4 = vcmp.gt.f32.partialorder %v688_v18, 0.0 }
 0x72a   : > { %v693_v21 = vmul.f32 1.442695, %v692_v20 }
 0x72c   : > { %1117 = vpow2.f32 %v693_v21 }
 0x736   : > { %v1118_v22 = vpop.eup %1117 }
 0x737   : > { %v926_v23 = vadd.f32 -1.0, %v1118_v22 }
 0x739   : > { %v696_v24 = vsel %vm691_vm4, %v688_v18, %v926_v23 }
 0x73a   : > { %1002 = vmatmul.mubr.msk.f32.vlgmr.msra.gmra.mrb[4].mxu0 %vm247_vm1, %v696_v24 }
 0x80d   : > { %v775_v26 = vpop.f32.mrb[4].mxu0 }
 0x80e   : > { %v776_v27 = vadd.f32 %v775_v26, %v705_v0  ;;  %v1003_v28 = vpop.f32.mrb[5].mxu0 }
 0x810   : > { %v779_v29 = vadd.f32 %v776_v27, %v609_v8 }
 0x812   : > { %v780_v30 = vsel %vm247_vm1, %v779_v29, 0.0 }
 0x813   : > { %781 = vadd.xlane.f32.xlu0 %v780_v30 }
 0x8a0   : > { %v782_v31 = vpop.xlane.xlu0 %781 }
 0x8a1   : > { %v783_v32 = vmul.f32 0.03125, %v782_v31 }
 0x8a3   : > { %v784_v33 = vsub.f32 %v779_v29, %v783_v32 }
 0x8a5   : > { %v785_v34 = vmul.f32 %v784_v33, %v784_v33 }
 0x8a7   : > { %v786_v35 = vsel %vm247_vm1, %v785_v34, 0.0 }
 0x8a8   : > { %787 = vadd.xlane.f32.xlu1 %v786_v35 }
 0x935   : > { %v788_v36 = vpop.xlane.xlu1 %787 }
 0x936   : > { %v789_v37 = vmul.f32 0.03125, %v788_v36 }
 0x938   : > { %v790_v38 = vadd.f32 1e-05, %v789_v37 }
 0x93a   : > { %1119 = vrsqrt.f32 %v790_v38 }
 0x944   : > { %v1120_v42 = vpop.eup %1119 }
 0x945   : > { %v792_v43 = vmul.f32 %v1120_v42, %v784_v33 }
 0x947   : > { %v797_v45 = vmul.f32 %v796_v41, %v792_v43 }
 0x949   : > { %v802_v46 = vadd.f32 %v801_v44, %v797_v45 }
 0x94b   : > { %803 = vst.msk [vmem:[%s241_s24] sm:$0xff] %vm247_vm1, %v802_v46 }
 0x94c   : > { %1220 = shalt.err (!%p1217_p2)
}
 0x94d   : > { %s1221_s29 = scalar_lea.hbm %s1552_s12, 128  ;;  %s1225_s30 = scalar_lea.hbm %s1601_s4, 256 }
 0x94e   : > { %p1222_p13 = scmp.ne.s32.totalorder %s1552_s12, %s1221_s29  ;;  %p1226_p4 = scmp.lt.u32.totalorder %s1552_s12, %s1601_s4 }
 0x94f   : > { %p1227_p5 = scmp.lt.u32.totalorder %s1225_s30, %s1221_s29  ;;  %p1229_p11 = scmp.lt.u32.totalorder %s1221_s29, %s1552_s12 }
 0x950   : > { %p1223_p6 = pnand %p1222_p13, %p1615_p0 }
 0x951   : > { %p1228_p8 = por %p1227_p5, %p1226_p4 }
 0x952   : > { %p1224_p10 = pneg %p1223_p6 }
 0x953   : > { %p1230_p1 = por %p1229_p11, %p1228_p8 }
 0x955   : > { %p1231_p3 = pnand %p1230_p1, %p1224_p10 }
 0x957   : > { %1234 = shalt.err (!%p1231_p3)
}
 0x958   : > { %1035 = dma.vmem_to_hbm [thread:$0]  (%p1615_p0), %s1554_s20, 128, %s1552_s12, %s805_s7  }
 0x959 PF: > { %s830_s26 = sand.u32 1, %s1265_s15   ;;  %p1616_p7 = scmp.ne.s32.totalorder %s1606_s22, 0 }
 0x95a   : > { %p1617_p9 = scmp.ge.s32.totalorder %s1277_s18, 2  ;;  %s831_s10 = scalar_lea.sflag [#allocation4], %s830_s26 }
 0x95c   : > { %p1049_p12 = pnand %p1617_p9, %p1616_p7 }
 0x95e   : > { %1260 = dma.done.wait (!%p1049_p12), %s831_s10, 128  }
 0x95f   : > { %1262 = vsyncadd (!%p1049_p12), %s831_s10, 4294967168  ;;  %p18_p2 = scmp.ge.s32.totalorder %s1428_s9, 4   ;;  %s1618_s15 = smov %s1269_s16 }
 0x960   : > { %s1619_s16 = smov %s1273_s17  ;;  %s1620_s17 = smov %s1444_s14 }
 0x961   : > { %s1621_s18 = smov %s1428_s9  ;;  %20 = sbr.rel (!%p18_p2) target bundleno = 6 (0x6), region = 90 }
 0x968   :  { %836 = vsyncpa [#allocation3], 1 }
 0x969   :  { %838 = vsyncpa [#allocation3 + $0x1], 1 }
 0x96a   :  { %839 = vsyncpa [#allocation6], 1 }
 0x96b   :  { %840 = vsyncpa [#allocation4], 1 }
 0x96c   :  { %842 = vsyncpa [#allocation4 + $0x1], 1 }

</bundles_post_ra>
